<compile_context>
chip_gen: v6e
topology: v6e:2x2x1
jax: 0.10.0
libtpu: 0.0.40
codegen_flags: <defaults>
</compile_context>

<pallas_src>
import functools

import jax
import jax.numpy as jnp
import numpy as np
from jax.experimental import pallas as pl
from jax.experimental.pallas import tpu as pltpu

_VMEM_LIMIT = 48 * 1024 * 1024  # v7x-safe (64 MiB physical); fine on v5e/v6e.


# ----------------------------------------------------------------------------
# Kernel 1: synthetic MiDaS trunk + head, one lane-chunk of tokens per step.
# Layout is transposed: features on sublanes, tokens on the 128-lane axis, so
# the head output is a lane-dense (1, TN) row.  Normalization is pre-folded
# into w_emb / b_emb; the head is algebraically folded through the MLP.
# ----------------------------------------------------------------------------
def _trunk_kernel(x_ref, wemb_ref, bemb_ref, w1_ref, whead_ref, wfold_ref,
                  out_ref):
    x = x_ref[...]                                            # (pdim, TN) bf16

    # patch embedding (stride-P conv as matmul), normalization folded in
    h = jnp.dot(wemb_ref[...], x, preferred_element_type=jnp.float32)
    h = jnp.maximum(h + bemb_ref[...], 0.0)                   # (E, TN) f32
    h_bf = h.astype(jnp.bfloat16)

    # tiny transformer-block stand-in: MLP (first layer) ...
    h1 = jnp.dot(w1_ref[...], h_bf, preferred_element_type=jnp.float32)
    h1 = jnp.maximum(h1, 0.0)                                 # (M, TN)

    # ... with the second MLP layer + residual folded into the 1-channel head:
    #   head(w2ᵀ h1 + h) = (w2 @ w_head)ᵀ h1 + w_headᵀ h     (biases are zero)
    d = jnp.dot(wfold_ref[...], h1.astype(jnp.bfloat16),
                preferred_element_type=jnp.float32)
    d = d + jnp.dot(whead_ref[...], h_bf, preferred_element_type=jnp.float32)
    out_ref[...] = jnp.maximum(d, 0.0)                        # (1, TN) lane-dense


# ----------------------------------------------------------------------------
# Kernel 2: bicubic upsampling (align_corners=False, a=-0.75), tiled over
# output rows:  out_tile = A_h_tile @ depth_small @ B_w^T
# ----------------------------------------------------------------------------
def _bicubic_kernel(a_ref, d_ref, bt_ref, out_ref):
    tmp = jnp.dot(a_ref[...], d_ref[...], preferred_element_type=jnp.float32)
    out_ref[...] = jnp.dot(tmp.astype(bt_ref.dtype), bt_ref[...],
                           preferred_element_type=jnp.float32)


# ----------------------------------------------------------------------------
# Bicubic interpolation matrices (torch bicubic, a=-0.75, align_corners=False,
# border-replicate).  Built in numpy so they constant-fold at trace time.
# ----------------------------------------------------------------------------
def _cubic_weight_np(t, a=-0.75):
    at = np.abs(t)
    w1 = (a + 2.0) * at**3 - (a + 3.0) * at**2 + 1.0
    w2 = a * at**3 - 5.0 * a * at**2 + 8.0 * a * at - 4.0 * a
    return np.where(at <= 1.0, w1, np.where(at < 2.0, w2, 0.0))


@functools.lru_cache(maxsize=None)
def _bicubic_matrix_np(n_out, n_in):
    scale = n_in / n_out
    i = np.arange(n_out)
    src = (i + 0.5) * scale - 0.5
    fl = np.floor(src)
    frac = src - fl
    mat = np.zeros((n_out, n_in), np.float64)
    for k in range(-1, 3):
        idx = np.clip(fl.astype(np.int64) + k, 0, n_in - 1)
        w = _cubic_weight_np(frac - float(k))
        np.add.at(mat, (i, idx), w)        # border-replicate duplicates add up
    return mat.astype(np.float32)


# ----------------------------------------------------------------------------
# Tile-size helpers
# ----------------------------------------------------------------------------
def _pick_token_tile(npad):
    """Largest multiple-of-128 divisor of npad (a multiple of 128) that is
    <= 512; keeps >= 2 grid steps when possible so 'parallel' can shard the
    trunk across v7x's two TensorCores."""
    cap = 512
    if npad >= 256:
        cap = min(cap, npad // 2)
    best, t = 128, 128
    while t <= cap:
        if npad % t == 0:
            best = t
        t += 128
    return best


def _pick_bicubic_row_tile(h_out, w_out, target_bytes=4 << 20):
    """Row tile so the (TH, W) f32 output tile is ~target_bytes; full height
    for small images (no forced >=2 steps)."""
    max_rows = max(8, target_bytes // (w_out * 4))
    if h_out <= max_rows:
        return h_out
    best, t = None, 8
    while t <= max_rows:
        if h_out % t == 0:
            best = t
        t += 8
    return best if best is not None else h_out


# ----------------------------------------------------------------------------
# Wrapper
# ----------------------------------------------------------------------------
class DepthEstimatorPallas:
    """Synthetic, deterministic stand-in for the MiDaS-based DepthEstimator."""

    def __init__(self, patch=4, embed_dim=128, mlp_dim=256,
                 key=jax.random.PRNGKey(42)):
        self.patch = patch
        self.embed_dim = embed_dim
        self.mlp_dim = mlp_dim
        self.pdim = patch * patch * 3

        ks = jax.random.split(key, 4)
        s = 0.1
        w_emb = s * jax.random.normal(ks[0], (self.pdim, embed_dim), jnp.float32)
        w1 = s * jax.random.normal(ks[1], (embed_dim, mlp_dim), jnp.float32)
        w2 = s * jax.random.normal(ks[2], (mlp_dim, embed_dim), jnp.float32)
        w_head = s * jax.random.normal(ks[3], (embed_dim, 1), jnp.float32)

        # Fold dpt_transform normalization ((x/255 - 0.5)*2 == x*(2/255) - 1)
        # into the patch embedding:  W' = (2/255) W,  b' = -1ᵀW.
        self.w_emb_t = (w_emb * (2.0 / 255.0)).T.astype(jnp.bfloat16)  # (E, pdim)
        self.b_emb = (-jnp.sum(w_emb, axis=0)).reshape(embed_dim, 1)   # (E, 1) f32

        self.w1_t = w1.T.astype(jnp.bfloat16)                          # (M, E)
        # Algebraic head fold (only valid for this synthetic trunk, where the
        # MLP output feeds nothing but the head):
        self.w_head_t = w_head.T.astype(jnp.bfloat16)                  # (1, E)
        self.w_fold = (w2 @ w_head).T.astype(jnp.bfloat16)             # (1, M)
        # MLP / head biases of the stand-in are zero -> dropped from the kernel.

    @functools.partial(jax.jit, static_argnums=0)
    def forward(self, img):
        """img: (H, W, 3) float32 values in [0, 255]. Returns (H, W) depth."""
        H, W, C = img.shape
        p = self.patch
        assert C == 3 and H % p == 0 and W % p == 0, (H, W, C)
        Hp, Wp = H // p, W // p
        pdim, E, M = self.pdim, self.embed_dim, self.mlp_dim

        # --- patch extraction: (pdim, Ntok), features on sublanes, bf16 ------
        x = img.reshape(Hp, p, Wp, p, C).transpose(1, 3, 4, 0, 2)  # (p,p,C,Hp,Wp)
        patches_t = x.reshape(pdim, Hp * Wp).astype(jnp.bfloat16)

        ntok = Hp * Wp
        npad = -(-ntok // 128) * 128
        if npad != ntok:
            patches_t = jnp.pad(patches_t, ((0, 0), (0, npad - ntok)))
        tn = _pick_token_tile(npad)

        # --- synthetic MiDaS trunk + head, gridded over token lane-chunks ----
        depth_flat = pl.pallas_call(
            _trunk_kernel,
            out_shape=jax.ShapeDtypeStruct((1, npad), jnp.float32),
            grid=(npad // tn,),
            in_specs=[
                pl.BlockSpec((pdim, tn), lambda j: (0, j)),   # token chunk
                pl.BlockSpec((E, pdim), lambda j: (0, 0)),    # w_emb_t (resident)
                pl.BlockSpec((E, 1), lambda j: (0, 0)),       # b_emb
                pl.BlockSpec((M, E), lambda j: (0, 0)),       # w1_t
                pl.BlockSpec((1, E), lambda j: (0, 0)),       # w_head_t
                pl.BlockSpec((1, M), lambda j: (0, 0)),       # w_fold
            ],
            out_specs=pl.BlockSpec((1, tn), lambda j: (0, j)),  # lane-dense
            compiler_params=pltpu.CompilerParams(
                dimension_semantics=("parallel",),
                vmem_limit_bytes=_VMEM_LIMIT),
        )(patches_t, self.w_emb_t, self.b_emb, self.w1_t,
          self.w_head_t, self.w_fold)

        depth_small = depth_flat[0, :ntok].reshape(Hp, Wp)

        # --- bicubic upsample to img.shape[:2], tiled over output rows -------
        a_h = jnp.asarray(_bicubic_matrix_np(H, Hp))        # (H, Hp)
        b_w_t = jnp.asarray(_bicubic_matrix_np(W, Wp).T)    # (Wp, W)
        if Wp >= 128:
            # MXU-bound regime at large coarse grids: bf16 inputs, f32 accumulate.
            a_h = a_h.astype(jnp.bfloat16)
            b_w_t = b_w_t.astype(jnp.bfloat16)
            d_in = depth_small.astype(jnp.bfloat16)
        else:
            d_in = depth_small

        th = _pick_bicubic_row_tile(H, W)

        depth = pl.pallas_call(
            _bicubic_kernel,
            out_shape=jax.ShapeDtypeStruct((H, W), jnp.float32),
            grid=(H // th,),
            in_specs=[
                pl.BlockSpec((th, Hp), lambda i: (i, 0)),    # A_h row tile
                pl.BlockSpec((Hp, Wp), lambda i: (0, 0)),    # depth_small (resident)
                pl.BlockSpec((Wp, W), lambda i: (0, 0)),     # B_w^T (resident)
            ],
            out_specs=pl.BlockSpec((th, W), lambda i: (i, 0)),  # lane-dense
            compiler_params=pltpu.CompilerParams(
                dimension_semantics=("parallel",),
                vmem_limit_bytes=_VMEM_LIMIT),
        )(a_h, d_in, b_w_t)

        return depth  # analogous to depth_map.squeeze() for a single image


if __name__ == "__main__":
    key = jax.random.PRNGKey(0)
    H, W = 64, 64
    # deterministic "image": raw pixel values in [0, 255]
    img = jax.random.uniform(key, (H, W, 3), jnp.float32, minval=0.0, maxval=255.0)

    model = DepthEstimatorPallas(patch=4, embed_dim=128, mlp_dim=256)
    depth = model.forward(img)
    jax.block_until_ready(depth)

    assert depth.shape == (H, W), depth.shape
    assert depth.dtype == jnp.float32
    assert bool(jnp.all(jnp.isfinite(depth)))
    print("KERNEL_OK")
</pallas_src>

<mosaic_0001>
module attributes {stable_mosaic.version = 11 : i64} {
  func.func @_trunk_kernel(%arg0: i32, %arg1: memref<48x128xbf16, #tpu.memory_space<vmem>>, %arg2: memref<128x48xbf16, #tpu.memory_space<vmem>>, %arg3: memref<128x1xf32, #tpu.memory_space<vmem>>, %arg4: memref<256x128xbf16, #tpu.memory_space<vmem>>, %arg5: memref<1x128xbf16, #tpu.memory_space<vmem>>, %arg6: memref<1x256xbf16, #tpu.memory_space<vmem>>, %arg7: memref<1x128xf32, #tpu.memory_space<vmem>>) attributes {dimension_semantics = [#tpu.dimension_semantics<parallel>], iteration_bounds = array<i64: 2>, scalar_prefetch = 0 : i64, scratch_operands = 0 : i64, tpu.core_type = #tpu.core_type<tc>, window_params = [{transform_indices = @transform_0, window_bounds = array<i64: 48, 128>}, {pipeline_mode = #tpu.pipeline_mode<synchronous>, transform_indices = @transform_1, window_bounds = array<i64: 128, 48>}, {pipeline_mode = #tpu.pipeline_mode<synchronous>, transform_indices = @transform_2, window_bounds = array<i64: 128, 1>}, {pipeline_mode = #tpu.pipeline_mode<synchronous>, transform_indices = @transform_3, window_bounds = array<i64: 256, 128>}, {pipeline_mode = #tpu.pipeline_mode<synchronous>, transform_indices = @transform_4, window_bounds = array<i64: 1, 128>}, {pipeline_mode = #tpu.pipeline_mode<synchronous>, transform_indices = @transform_5, window_bounds = array<i64: 1, 256>}, {transform_indices = @transform_6, window_bounds = array<i64: 1, 128>}]} {
    %c0 = arith.constant 0 : index
    %c0_0 = arith.constant 0 : index
    %0 = vector.load %arg1[%c0, %c0_0] : memref<48x128xbf16, #tpu.memory_space<vmem>>, vector<48x128xbf16>
    %c0_1 = arith.constant 0 : index
    %c0_2 = arith.constant 0 : index
    %1 = vector.load %arg2[%c0_1, %c0_2] : memref<128x48xbf16, #tpu.memory_space<vmem>>, vector<128x48xbf16>
    %cst = arith.constant dense<0.000000e+00> : vector<128x128xf32>
    %2 = tpu.matmul %1, %0, %cst {dimension_numbers = #tpu.dot_dimension_numbers<[1], [0], [0], [1], [0, 0, 1, 1], [], []>} : vector<128x48xbf16>, vector<48x128xbf16>, vector<128x128xf32> -> vector<128x128xf32>
    %c0_3 = arith.constant 0 : index
    %c0_4 = arith.constant 0 : index
    %3 = vector.load %arg3[%c0_3, %c0_4] : memref<128x1xf32, #tpu.memory_space<vmem>>, vector<128x1xf32>
    %4 = vector.broadcast %3 : vector<128x1xf32> to vector<128x128xf32>
    %5 = arith.addf %2, %4 : vector<128x128xf32>
    %cst_5 = arith.constant 0.000000e+00 : f32
    %6 = vector.broadcast %cst_5 : f32 to vector<128x128xf32>
    %7 = arith.maximumf %5, %6 : vector<128x128xf32>
    %8 = arith.truncf %7 : vector<128x128xf32> to vector<128x128xbf16>
    %c0_6 = arith.constant 0 : index
    %c0_7 = arith.constant 0 : index
    %9 = vector.load %arg4[%c0_6, %c0_7] : memref<256x128xbf16, #tpu.memory_space<vmem>>, vector<256x128xbf16>
    %cst_8 = arith.constant dense<0.000000e+00> : vector<256x128xf32>
    %10 = tpu.matmul %9, %8, %cst_8 {dimension_numbers = #tpu.dot_dimension_numbers<[1], [0], [0], [1], [0, 0, 1, 1], [], []>} : vector<256x128xbf16>, vector<128x128xbf16>, vector<256x128xf32> -> vector<256x128xf32>
    %cst_9 = arith.constant 0.000000e+00 : f32
    %11 = vector.broadcast %cst_9 : f32 to vector<256x128xf32>
    %12 = arith.maximumf %10, %11 : vector<256x128xf32>
    %c0_10 = arith.constant 0 : index
    %c0_11 = arith.constant 0 : index
    %13 = vector.load %arg6[%c0_10, %c0_11] : memref<1x256xbf16, #tpu.memory_space<vmem>>, vector<1x256xbf16>
    %14 = arith.truncf %12 : vector<256x128xf32> to vector<256x128xbf16>
    %cst_12 = arith.constant dense<0.000000e+00> : vector<1x128xf32>
    %15 = tpu.matmul %13, %14, %cst_12 {dimension_numbers = #tpu.dot_dimension_numbers<[1], [0], [0], [1], [0, 0, 1, 1], [], []>} : vector<1x256xbf16>, vector<256x128xbf16>, vector<1x128xf32> -> vector<1x128xf32>
    %c0_13 = arith.constant 0 : index
    %c0_14 = arith.constant 0 : index
    %16 = vector.load %arg5[%c0_13, %c0_14] : memref<1x128xbf16, #tpu.memory_space<vmem>>, vector<1x128xbf16>
    %cst_15 = arith.constant dense<0.000000e+00> : vector<1x128xf32>
    %17 = tpu.matmul %16, %8, %cst_15 {dimension_numbers = #tpu.dot_dimension_numbers<[1], [0], [0], [1], [0, 0, 1, 1], [], []>} : vector<1x128xbf16>, vector<128x128xbf16>, vector<1x128xf32> -> vector<1x128xf32>
    %18 = arith.addf %15, %17 : vector<1x128xf32>
    %cst_16 = arith.constant 0.000000e+00 : f32
    %19 = vector.broadcast %cst_16 : f32 to vector<1x128xf32>
    %20 = arith.maximumf %18, %19 : vector<1x128xf32>
    %c0_17 = arith.constant 0 : index
    %c0_18 = arith.constant 0 : index
    %21 = vector.load %arg7[%c0_17, %c0_18] : memref<1x128xf32, #tpu.memory_space<vmem>>, vector<1x128xf32>
    tpu.vector_store %arg7[%c0_17, %c0_18], %20 {strides = array<i32>} : memref<1x128xf32, #tpu.memory_space<vmem>>, vector<1x128xf32>,
    return
  }
  func.func @transform_0(%arg0: i32) -> (i32, i32) {
    %c0_i32 = arith.constant 0 : i32
    %c0_i32_0 = arith.constant 0 : i32
    return %c0_i32, %arg0 : i32, i32
  }
  func.func @transform_1(%arg0: i32) -> (i32, i32) {
    %c0_i32 = arith.constant 0 : i32
    %c0_i32_0 = arith.constant 0 : i32
    %c0_i32_1 = arith.constant 0 : i32
    return %c0_i32, %c0_i32_0 : i32, i32
  }
  func.func @transform_2(%arg0: i32) -> (i32, i32) {
    %c0_i32 = arith.constant 0 : i32
    %c0_i32_0 = arith.constant 0 : i32
    %c0_i32_1 = arith.constant 0 : i32
    return %c0_i32, %c0_i32_0 : i32, i32
  }
  func.func @transform_3(%arg0: i32) -> (i32, i32) {
    %c0_i32 = arith.constant 0 : i32
    %c0_i32_0 = arith.constant 0 : i32
    %c0_i32_1 = arith.constant 0 : i32
    return %c0_i32, %c0_i32_0 : i32, i32
  }
  func.func @transform_4(%arg0: i32) -> (i32, i32) {
    %c0_i32 = arith.constant 0 : i32
    %c0_i32_0 = arith.constant 0 : i32
    %c0_i32_1 = arith.constant 0 : i32
    return %c0_i32, %c0_i32_0 : i32, i32
  }
  func.func @transform_5(%arg0: i32) -> (i32, i32) {
    %c0_i32 = arith.constant 0 : i32
    %c0_i32_0 = arith.constant 0 : i32
    %c0_i32_1 = arith.constant 0 : i32
    return %c0_i32, %c0_i32_0 : i32, i32
  }
  func.func @transform_6(%arg0: i32) -> (i32, i32) {
    %c0_i32 = arith.constant 0 : i32
    %c0_i32_0 = arith.constant 0 : i32
    return %c0_i32, %arg0 : i32, i32
  }
}

module attributes {stable_mosaic.version = 11 : i64} {
  func.func @_bicubic_kernel(%arg0: i32, %arg1: memref<64x16xf32, #tpu.memory_space<vmem>>, %arg2: memref<16x16xf32, #tpu.memory_space<vmem>>, %arg3: memref<16x64xf32, #tpu.memory_space<vmem>>, %arg4: memref<64x64xf32, #tpu.memory_space<vmem>>) attributes {dimension_semantics = [#tpu.dimension_semantics<parallel>], iteration_bounds = array<i64: 1>, scalar_prefetch = 0 : i64, scratch_operands = 0 : i64, tpu.core_type = #tpu.core_type<tc>, window_params = [{transform_indices = @transform_0, window_bounds = array<i64: 64, 16>}, {pipeline_mode = #tpu.pipeline_mode<synchronous>, transform_indices = @transform_1, window_bounds = array<i64: 16, 16>}, {pipeline_mode = #tpu.pipeline_mode<synchronous>, transform_indices = @transform_2, window_bounds = array<i64: 16, 64>}, {transform_indices = @transform_3, window_bounds = array<i64: 64, 64>}]} {
    %c0 = arith.constant 0 : index
    %c0_0 = arith.constant 0 : index
    %0 = vector.load %arg1[%c0, %c0_0] : memref<64x16xf32, #tpu.memory_space<vmem>>, vector<64x16xf32>
    %c0_1 = arith.constant 0 : index
    %c0_2 = arith.constant 0 : index
    %1 = vector.load %arg2[%c0_1, %c0_2] : memref<16x16xf32, #tpu.memory_space<vmem>>, vector<16x16xf32>
    %cst = arith.constant dense<0.000000e+00> : vector<64x16xf32>
    %2 = tpu.matmul %0, %1, %cst {dimension_numbers = #tpu.dot_dimension_numbers<[1], [0], [0], [1], [0, 0, 1, 1], [], []>} : vector<64x16xf32>, vector<16x16xf32>, vector<64x16xf32> -> vector<64x16xf32>
    %c0_3 = arith.constant 0 : index
    %c0_4 = arith.constant 0 : index
    %3 = vector.load %arg3[%c0_3, %c0_4] : memref<16x64xf32, #tpu.memory_space<vmem>>, vector<16x64xf32>
    %cst_5 = arith.constant dense<0.000000e+00> : vector<64x64xf32>
    %4 = tpu.matmul %2, %3, %cst_5 {dimension_numbers = #tpu.dot_dimension_numbers<[1], [0], [0], [1], [0, 0, 1, 1], [], []>} : vector<64x16xf32>, vector<16x64xf32>, vector<64x64xf32> -> vector<64x64xf32>
    %c0_6 = arith.constant 0 : index
    %c0_7 = arith.constant 0 : index
    %5 = vector.load %arg4[%c0_6, %c0_7] : memref<64x64xf32, #tpu.memory_space<vmem>>, vector<64x64xf32>
    tpu.vector_store %arg4[%c0_6, %c0_7], %4 {strides = array<i32>} : memref<64x64xf32, #tpu.memory_space<vmem>>, vector<64x64xf32>,
    return
  }
  func.func @transform_0(%arg0: i32) -> (i32, i32) {
    %c0_i32 = arith.constant 0 : i32
    %c0_i32_0 = arith.constant 0 : i32
    return %arg0, %c0_i32 : i32, i32
  }
  func.func @transform_1(%arg0: i32) -> (i32, i32) {
    %c0_i32 = arith.constant 0 : i32
    %c0_i32_0 = arith.constant 0 : i32
    %c0_i32_1 = arith.constant 0 : i32
    return %c0_i32, %c0_i32_0 : i32, i32
  }
  func.func @transform_2(%arg0: i32) -> (i32, i32) {
    %c0_i32 = arith.constant 0 : i32
    %c0_i32_0 = arith.constant 0 : i32
    %c0_i32_1 = arith.constant 0 : i32
    return %c0_i32, %c0_i32_0 : i32, i32
  }
  func.func @transform_3(%arg0: i32) -> (i32, i32) {
    %c0_i32 = arith.constant 0 : i32
    %c0_i32_0 = arith.constant 0 : i32
    return %arg0, %c0_i32 : i32, i32
  }
}

</mosaic_0001>

<bundles_post_ra>
// kernel: squeeze.1
= control target key start
LH: loop header
LB: loop body
LE: loop exit
PB: predicated region body
PF: predicated region fallthrough
CT: control target
= control target key end

     0   :  { %s67_s8 = smov 80   ;;  %vm8_vm0 = vcmask 130048   ;;  %s68_s11 = smov 96   ;;  %s118_s0 = inlined_call_operand.vmem [shape: f32[256], index: 0, kind: input, shape index: {}]   ;;  %s119_s1 = inlined_call_operand.vmem [shape: f32[16,16], index: 1, kind: output, shape index: {}]  }
   0x1   :  { %v5_v0 = vld [vmem:[%s118_s0] sm:$0x3]  ;;  %s66_s0 = smov 112   ;;  %s69_s12 = smov 64  }
   0x2   :  { %6 = vst [vmem:[#allocation0] sm:$0x3] %v5_v0  ;;  %s70_s13 = smov 48   ;;  %s71_s14 = smov 32  }
   0x3   :  { %s72_s15 = smov 16  }
   0x9   :  { %v10_v1 = vld [vmem:[#allocation0] sm:$0x3]  }
   0xa   :  { %v22_v2 = vld [vmem:[#allocation0] sm:$0x3]   ;;  %11 = vrot.lane.b32.xlu0 %v10_v1, %s66_s0 }
   0xb   :  { %23 = vrot.lane.b32.xlu1 %v22_v2, %s67_s8  ;;  %v16_v3 = vld [vmem:[#allocation0] sm:$0x3]  }
   0xc   :  { %v28_v4 = vld [vmem:[#allocation0] sm:$0x3]  }
   0xd   :  { %v7_v5 = vld [vmem:[#allocation0] sm:$0x3]  }
   0xe   :  { %9 = vst.msk [vmem:[%s119_s1] ss:$8 sm:$0x3] %vm8_vm0, %v7_v5   ;;  %17 = vrot.lane.b32.xlu0 %v16_v3, %s68_s11  ;;  %v34_v6 = vld [vmem:[#allocation0] sm:$0x3]  }
   0xf   :  { %29 = vrot.lane.b32.xlu1 %v28_v4, %s69_s12  ;;  %v40_v7 = vld [vmem:[#allocation0] sm:$0x3]  }
  0x10   :  { %v46_v8 = vld [vmem:[#allocation0] sm:$0x3]  }
  0x12   :  { %35 = vrot.lane.b32.xlu0 %v34_v6, %s70_s13 }
  0x13   :  { %41 = vrot.lane.b32.xlu1 %v40_v7, %s71_s14 }
  0x16   :  { %47 = vrot.lane.b32.xlu0 %v46_v8, %s72_s15 }
  0x7c   :  { %v12_v9 = vpop.permute.xlu0 %11  }
  0x7d   :  { %v24_v10 = vpop.permute.xlu1 %23   ;;  %52 = vst.msk [vmem:[%s119_s1 + $0x1] ss:$8 sm:$0x3] %vm8_vm0, %v12_v9  }
  0x7e   :  { %54 = vst.msk [vmem:[%s119_s1 + $0x3] ss:$8 sm:$0x3] %vm8_vm0, %v24_v10  }
  0x80   :  { %v18_v11 = vpop.permute.xlu0 %17  }
  0x81   :  { %v30_v12 = vpop.permute.xlu1 %29   ;;  %53 = vst.msk [vmem:[%s119_s1 + $0x2] ss:$8 sm:$0x3] %vm8_vm0, %v18_v11  }
  0x82   :  { %55 = vst.msk [vmem:[%s119_s1 + $0x4] ss:$8 sm:$0x3] %vm8_vm0, %v30_v12  }
  0x84   :  { %v36_v13 = vpop.permute.xlu0 %35  }
  0x85   :  { %v42_v14 = vpop.permute.xlu1 %41   ;;  %56 = vst.msk [vmem:[%s119_s1 + $0x5] ss:$8 sm:$0x3] %vm8_vm0, %v36_v13  }
  0x86   :  { %57 = vst.msk [vmem:[%s119_s1 + $0x6] ss:$8 sm:$0x3] %vm8_vm0, %v42_v14  }
  0x88   :  { %v48_v15 = vpop.permute.xlu0 %47  }
  0x89   :  { %58 = vst.msk [vmem:[%s119_s1 + $0x7] ss:$8 sm:$0x3] %vm8_vm0, %v48_v15  }

// kernel: forward.3
= control target key start
LH: loop header
LB: loop body
LE: loop exit
PB: predicated region body
PF: predicated region fallthrough
CT: control target
= control target key end

     0   :  { %vm25_vm0 = vcmask 130048   ;;  %s490_s0 = inlined_call_operand.vmem [shape: f32[64,16], index: 0, kind: input, shape index: {}]   ;;  %s491_s1 = inlined_call_operand.vmem [shape: f32[16,16], index: 1, kind: input, shape index: {}]   ;;  %s492_s2 = inlined_call_operand.vmem [shape: f32[16,64], index: 2, kind: input, shape index: {}]   ;;  %s493_s3 = inlined_call_operand.hbm [shape: f32[64,64], index: 3, kind: output, shape index: {}]  }
   0x1   :  { %v24_v0 = vld [vmem:[%s491_s1 + $0x8] sm:$0xff]  ;;  %v23_v1 = vld [vmem:[%s491_s1] sm:$0xff]  ;;  %v17_v4 = vld [vmem:[%s490_s0 + $0x10] sm:$0xff] }
   0x2   :  { %v15_v2 = vld [vmem:[%s490_s0] sm:$0xff]  ;;  %347 = vmatprep.subr.mxu0 %v24_v0  ;;  %v16_v3 = vld [vmem:[%s490_s0 + $0x8] sm:$0xff] }
   0x3   :  { %351 = vmatprep.mubr.msk.f32.mxu0 %vm25_vm0, %v15_v2  ;;  %348 = vmatpush3.msra.mxu0 %v24_v0 }
   0x4   :  { %349 = vmatprep.subr.mxu0 %v23_v1 }
   0x5   :  { %8 = vsyncpa [#allocation3], 0  ;;  %350 = vmatpush3.msra.mxu0 %v23_v1  ;;  %v18_v5 = vld [vmem:[%s490_s0 + $0x18] sm:$0xff]  ;;  %v19_v6 = vld [vmem:[%s490_s0 + $0x20] sm:$0xff]  ;;  %vm286_vm1 = vcmask 523264  }
   0x6   :  { %352 = vmatmul.mubr.msk.f32.vlgmr.msra.gmra.mxu0 %vm25_vm0, %v16_v3  ;;  %v20_v7 = vld [vmem:[%s490_s0 + $0x28] sm:$0xff]  ;;  %v21_v8 = vld [vmem:[%s490_s0 + $0x30] sm:$0xff]  ;;  %v22_v9 = vld [vmem:[%s490_s0 + $0x38] sm:$0xff]  ;;  %s404_s0 = smov [#allocation2]  }
   0x7   :  { %354 = vmatprep.mubr.msk.f32.mxu0 %vm25_vm0, %v17_v4  ;;  %v156_v10 = vld [vmem:[%s492_s2 + $0x8] sm:$0xff]  ;;  %v155_v11 = vld [vmem:[%s492_s2] sm:$0xff]  ;;  %s300_s2 = sshll.u32 %s404_s0, 4  ;;  %s301_s2 = int_to_ptr.vmem [resolvable:$true] %s300_s2 }
   0x8   :  { %363 = vmatprep.subr.mxu1 %v156_v10  ;;  %s382_s8 = scalar_lea.vmem %s301_s2, 1024  ;;  %p387_p1 = scmp.lt.s32.totalorder %s301_s2, %s301_s2 }
   0x9   :  { %364 = vmatpush3.msra.mxu1 %v156_v10  ;;  %p383_p0 = scmp.ne.s32.totalorder %s301_s2, %s382_s8  ;;  %p388_p2 = scmp.lt.s32.totalorder %s382_s8, %s382_s8 }
   0xa   :  { %355 = vmatmul.mubr.msk.f32.gmra.mxu0 %vm25_vm0, %v18_v5  ;;  %365 = vmatprep.subr.mxu1 %v155_v11 }
   0xb   :  { %357 = vmatprep.mubr.msk.f32.mxu0 %vm25_vm0, %v19_v6  ;;  %366 = vmatpush3.msra.mxu1 %v155_v11  ;;  %p389_p3 = por %p388_p2, %p387_p1 }
   0xd   :  { %p390_p4 = pnand %p389_p3, %p383_p0 }
   0xe   :  { %358 = vmatmul.mubr.msk.f32.gmra.mxu0 %vm25_vm0, %v20_v7 }
   0xf   :  { %360 = vmatprep.mubr.msk.f32.mxu0 %vm25_vm0, %v21_v8 }
  0x12   :  { %361 = vmatmul.mubr.msk.f32.gmra.mxu0 %vm25_vm0, %v22_v9 }
  0xc6   :  { %v353_v12 = vpop.f32.mrf.mxu0 }
  0xc8   :  { %v116_v13 = vpop.f32.mrf.mxu0 }
  0xc9   :  { %367 = vmatprep.mubr.msk.f32.mxu1 %vm25_vm0, %v116_v13 }
  0xca   :  { %v356_v14 = vpop.f32.mrf.mxu0  ;;  %368 = vmatmul.mubr.msk.f32.vlgmr.msra.gmra.mxu1 %vm25_vm0, %v353_v12 }
  0xcc   :  { %v126_v15 = vpop.f32.mrf.mxu0 }
  0xcd   :  { %370 = vmatprep.mubr.msk.f32.mxu1 %vm25_vm0, %v126_v15 }
  0xce   :  { %v359_v16 = vpop.f32.mrf.mxu0  ;;  %371 = vmatmul.mubr.msk.f32.gmra.mxu1 %vm25_vm0, %v356_v14 }
  0xd0   :  { %v136_v17 = vpop.f32.mrf.mxu0 }
  0xd1   :  { %373 = vmatprep.mubr.msk.f32.mxu1 %vm25_vm0, %v136_v17 }
  0xd2   :  { %v362_v18 = vpop.f32.mrf.mxu0  ;;  %374 = vmatmul.mubr.msk.f32.gmra.mxu1 %vm25_vm0, %v359_v16 }
  0xd4   :  { %v146_v19 = vpop.f32.mrf.mxu0 }
  0xd5   :  { %376 = vmatprep.mubr.msk.f32.mxu1 %vm25_vm0, %v146_v19 }
  0xd6   :  { %377 = vmatmul.mubr.msk.f32.gmra.mxu1 %vm25_vm0, %v362_v18 }
 0x18a   :  { %v369_v20 = vpop.f32.mrf.mxu1 }
 0x18b   :  { %288 = vst.msk [vmem:[#allocation2 + $0x8] sm:$0xff] %vm286_vm1, %v369_v20 }
 0x18c   :  { %v247_v21 = vpop.f32.mrf.mxu1 }
 0x18d   :  { %287 = vst.msk [vmem:[#allocation2] sm:$0xff] %vm286_vm1, %v247_v21 }
 0x18e   :  { %v372_v22 = vpop.f32.mrf.mxu1 }
 0x18f   :  { %290 = vst.msk [vmem:[#allocation2 + $0x18] sm:$0xff] %vm286_vm1, %v372_v22 }
 0x190   :  { %v257_v23 = vpop.f32.mrf.mxu1 }
 0x191   :  { %289 = vst.msk [vmem:[#allocation2 + $0x10] sm:$0xff] %vm286_vm1, %v257_v23 }
 0x192   :  { %v375_v24 = vpop.f32.mrf.mxu1 }
 0x193   :  { %292 = vst.msk [vmem:[#allocation2 + $0x28] sm:$0xff] %vm286_vm1, %v375_v24 }
 0x194   :  { %v267_v25 = vpop.f32.mrf.mxu1 }
 0x195   :  { %291 = vst.msk [vmem:[#allocation2 + $0x20] sm:$0xff] %vm286_vm1, %v267_v25 }
 0x196   :  { %v378_v26 = vpop.f32.mrf.mxu1 }
 0x197   :  { %294 = vst.msk [vmem:[#allocation2 + $0x38] sm:$0xff] %vm286_vm1, %v378_v26 }
 0x198   :  { %v277_v27 = vpop.f32.mrf.mxu1 }
 0x199   :  { %293 = vst.msk [vmem:[#allocation2 + $0x30] sm:$0xff] %vm286_vm1, %v277_v27 }
 0x19a   :  { %393 = shalt.err (!%p390_p4)
}
 0x19b   :  { %s405_s9 = smov 128   ;;  %s406_s10 = smov 8  }
 0x19c   :  { %306 = dma.vmem_to_hbm [thread:$0]  %s301_s2, 1024, %s493_s3, [#allocation3], %s405_s9, %s405_s9, %s406_s10  }
 0x19d   :  { %402 = dma.done.wait [#allocation3], 1024  }
 0x19e   :  { %403 = vsyncadd [#allocation3], 4294966272 }
 0x19f   :  { %310 = vsyncpa [#allocation3], 1 }

// kernel: forward.2
= control target key start
LH: loop header
LB: loop body
LE: loop exit
PB: predicated region body
PF: predicated region fallthrough
CT: control target
= control target key end

     0   :  { %s1455_s21 = smov 0   ;;  %s1457_s22 = smov 0   ;;  %s1691_s0 = inlined_call_operand.vmem [shape: bf16[48,256], index: 0, kind: input, shape index: {}]   ;;  %s1692_s1 = inlined_call_operand.vmem [shape: bf16[128,48], index: 1, kind: input, shape index: {}]   ;;  %s1693_s2 = inlined_call_operand.vmem [shape: f32[128,1], index: 2, kind: input, shape index: {}]   ;;  %s1694_s3 = inlined_call_operand.vmem [shape: bf16[256,128], index: 3, kind: input, shape index: {}]   ;;  %s1695_s4 = inlined_call_operand.vmem [shape: bf16[1,128], index: 4, kind: input, shape index: {}]   ;;  %s1696_s5 = inlined_call_operand.vmem [shape: bf16[1,256], index: 5, kind: input, shape index: {}]   ;;  %s1697_s6 = inlined_call_operand.vmem [shape: f32[1,256], index: 6, kind: output, shape index: {}]  }
   0x1   :  { %s1459_s23 = smov 0  }
   0x2 LB: > { %s1133_s24 = sadd.s32 4294967295, %s1414_s23   ;;  %s1472_s25 = sadd.s32 1, %s1414_s23   ;;  %s1414_s23 = sphi %s1459_s23, %s1700_s23   ;;  %s1410_s22 = sphi %s1457_s22, %s1699_s22   ;;  %s1406_s21 = sphi %s1455_s21, %s1698_s21  }
   0x3   : > { %s20_s26 = ssub.s32 %s1414_s23, %s1472_s25  ;;  %s23_s27 = sadd.s32 1, %s1410_s22 }
   0x4   : > { %p21_p0 = scmp.eq.s32.totalorder %s20_s26, 0  ;;  %p30_p1 = scmp.ne.s32.totalorder %s1410_s22, %s1406_s21 }
   0x5   : > { %p31_p2 = scmp.eq.s32.totalorder %s1414_s23, 0  ;;  %p1136_p4 = scmp.ge.s32.totalorder %s1414_s23, 2 }
   0x6   : > { %s1481_s28 = scalar_select %p21_p0, %s1410_s22, %s23_s27  }
   0x7   : > { %p32_p3 = por %p31_p2, %p30_p1  ;;  %202 = sbr.rel (%p1136_p4) target bundleno = 20 (0x14), region = 36 }
   0xc   : > { %205 = sbr.rel (!%p32_p3) target bundleno = 20 (0x14), region = 40  ;;  %s207_s29 = sand.u32 (%p32_p3), 1, %s1410_s22  }
   0xd   : > { %s1137_s30 = sshll.u32 (%p32_p3), %s1414_s23, 2  ;;  %s1333_s7 = smul.u32 (%p32_p3), 24, %s207_s29 }
   0xe   : > { %s211_s10 = scalar_lea.vmem (%p32_p3), %s1691_s0, %s1137_s30 }
   0xf   : > { %v228_v0 = vld [vmem:[%s211_s10] sm:$0xf] (%p32_p3)  ;;  %v230_v1 = vld [vmem:[%s211_s10 + $0x8] sm:$0xf] (%p32_p3)  ;;  %v232_v2 = vld [vmem:[%s211_s10 + $0x10] sm:$0xf] (%p32_p3) }
  0x10   : > { %v234_v3 = vld [vmem:[%s211_s10 + $0x18] sm:$0xf] (%p32_p3)  ;;  %v236_v4 = vld [vmem:[%s211_s10 + $0x20] sm:$0xf] (%p32_p3)  ;;  %s209_s11 = scalar_lea.vmem (%p32_p3), [#allocation2], %s1333_s7 }
  0x11   : > { %229 = vst [vmem:[%s209_s11] sm:$0xf] %v228_v0  ;;  %231 = vst [vmem:[%s209_s11 + $0x4] sm:$0xf] %v230_v1  ;;  %v238_v5 = vld [vmem:[%s211_s10 + $0x28] sm:$0xf] }
  0x12   : > { %233 = vst [vmem:[%s209_s11 + $0x8] sm:$0xf] %v232_v2  ;;  %235 = vst [vmem:[%s209_s11 + $0xc] sm:$0xf] %v234_v3 }
  0x13   : > { %237 = vst [vmem:[%s209_s11 + $0x10] sm:$0xf] %v236_v4  ;;  %239 = vst [vmem:[%s209_s11 + $0x14] sm:$0xf] %v238_v5 }
  0x14 PF: > { %p1138_p5 = scmp.ge.s32.totalorder %s1414_s23, 1  ;;  %p274_p6 = scmp.lt.s32.totalorder %s1414_s23, 3 }
  0x16   : > { %p275_p7 = pnand %p1138_p5, %p274_p6 }
  0x17   : > { %s281_s12 = sand.u32 (!%p275_p7), 1, %s1406_s21   ;;  %p308_p8 = scmp.lt.s32.totalorder (!%p275_p7), %s1133_s24, 1 }
  0x18   : > { %278 = sbr.rel (%p275_p7) target bundleno = 793 (0x319), region = 81 }
  0x19   : > { %s1334_s15 = smul.u32 (!%p275_p7), 24, %s281_s12 }
  0x1b   : > { %s283_s16 = scalar_lea.vmem (!%p275_p7), [#allocation2], %s1334_s15 }
  0x1d   : > { %v1368_v6 = vld [vmem:[%s1692_s1] sm:$0xff]   ;;  %vm488_vm0 = vcmask 392192   ;;  %v1416_v7 = vmov 0   ;;  %v1365_v8 = vld [vmem:[%s283_s16 + $0x10] sm:$0xff]   ;;  %v349_v13 = vld [vmem:[%s1693_s2 + $0x78] sm:$0xff]  ;;  %v1417_v34 = vmov 0.0  }
  0x1e   : > { %1249 = vmatprep.mubr.msk.bf16.mxu0 %vm488_vm0, %v1368_v6  ;;  %1363 = vset.pattern.permute.xlu0 %v1416_v7  ;;  %v1366_v9 = vld [vmem:[%s283_s16 + $0x8] sm:$0xff]   ;;  %v1367_v10 = vld [vmem:[%s283_s16] sm:$0xff]   ;;  %v348_v11 = vld [vmem:[%s1693_s2 + $0x70] sm:$0xff]  ;;  %vm1418_vm1 = vmmov 0   ;;  %s1702_s24 = smov (!%p308_p8, %s1133_s24), 1 }
  0x1f   : > { %1364 = vset.pattern.permute.xlu1 %v1416_v7  ;;  %1243 = vmatprep.subr.bf16.mxu0 %v1365_v8  ;;  %v346_v12 = vld [vmem:[%s1693_s2 + $0x60] sm:$0xff]  ;;  %v1369_v14 = vld [vmem:[%s1692_s1 + $0x8] sm:$0xff]   ;;  %v1370_v16 = vld [vmem:[%s1692_s1 + $0x10] sm:$0xff]   ;;  %s310_s30 = scalar_lea.vmem %s1697_s6, %s1702_s24 }
  0x20   : > { %1244 = vmatpush3.bf16.msra.mxu0 %v1365_v8  ;;  %422 = vperm.xlu0 %1363, %v348_v11   ;;  %v347_v15 = vld [vmem:[%s1693_s2 + $0x68] sm:$0xff]  ;;  %v344_v17 = vld [vmem:[%s1693_s2 + $0x50] sm:$0xff]  ;;  %v345_v18 = vld [vmem:[%s1693_s2 + $0x58] sm:$0xff] }
  0x21   : > { %1245 = vmatprep.subr.bf16.mxu0 %v1366_v9  ;;  %412 = vperm.xlu1 %1364, %v346_v12   ;;  %v342_v19 = vld [vmem:[%s1693_s2 + $0x40] sm:$0xff]  ;;  %v1371_v20 = vld [vmem:[%s1692_s1 + $0x18] sm:$0xff]   ;;  %v343_v21 = vld [vmem:[%s1693_s2 + $0x48] sm:$0xff] }
  0x22   : > { %v1372_v22 = vld [vmem:[%s1692_s1 + $0x20] sm:$0xff]   ;;  %v340_v23 = vld [vmem:[%s1693_s2 + $0x30] sm:$0xff]  ;;  %v341_v24 = vld [vmem:[%s1693_s2 + $0x38] sm:$0xff] }
  0x23   : > { %v338_v25 = vld [vmem:[%s1693_s2 + $0x20] sm:$0xff]  ;;  %v1373_v26 = vld [vmem:[%s1692_s1 + $0x28] sm:$0xff]   ;;  %v1374_v28 = vld [vmem:[%s1692_s1 + $0x30] sm:$0xff]  }
  0x24   : > { %1246 = vmatpush3.bf16.msra.mxu0 %v1366_v9  ;;  %427 = vperm.xlu0 %1363, %v349_v13   ;;  %v339_v27 = vld [vmem:[%s1693_s2 + $0x28] sm:$0xff]  ;;  %v336_v29 = vld [vmem:[%s1693_s2 + $0x10] sm:$0xff]  ;;  %v337_v30 = vld [vmem:[%s1693_s2 + $0x18] sm:$0xff] }
  0x25   : > { %1247 = vmatprep.subr.bf16.mxu0 %v1367_v10  ;;  %417 = vperm.xlu1 %1364, %v347_v15   ;;  %v334_v31 = vld [vmem:[%s1693_s2] sm:$0xff]  ;;  %v1375_v32 = vld [vmem:[%s1692_s1 + $0x38] sm:$0xff]   ;;  %v335_v33 = vld [vmem:[%s1693_s2 + $0x8] sm:$0xff] }
  0x26   : > { %v1376_v35 = vld [vmem:[%s1694_s3] sm:$0xff]  }
  0x27   : > { %1281 = vmatprep.mubr.bf16.mxu1 %v1376_v35 }
  0x28   : > { %1248 = vmatpush3.bf16.msra.mxu0 %v1367_v10  ;;  %402 = vperm.xlu0 %1363, %v344_v17  }
  0x29   : > { %407 = vperm.xlu1 %1364, %v345_v18   ;;  %1313 = vmatprep.subr.bf16.mxu0 %v1417_v34 }
  0x2b   : > { %1250 = vmatmul.mubr.msk.bf16.vlgmr.msra.gmra.mxu0 %vm488_vm0, %v1369_v14 }
  0x2c   : > { %1253 = vmatprep.mubr.msk.bf16.mxu0 %vm488_vm0, %v1370_v16  ;;  %392 = vperm.xlu0 %1363, %v342_v19  }
  0x2d   : > { %397 = vperm.xlu1 %1364, %v343_v21  }
  0x30   : > { %382 = vperm.xlu0 %1363, %v340_v23  }
  0x31   : > { %387 = vperm.xlu1 %1364, %v341_v24  }
  0x33   : > { %1254 = vmatmul.mubr.msk.bf16.gmra.mxu0 %vm488_vm0, %v1371_v20 }
  0x34   : > { %1257 = vmatprep.mubr.msk.bf16.mxu0 %vm488_vm0, %v1372_v22  ;;  %372 = vperm.xlu0 %1363, %v338_v25  }
  0x35   : > { %377 = vperm.xlu1 %1364, %v339_v27  }
  0x38   : > { %362 = vperm.xlu0 %1363, %v336_v29  }
  0x39   : > { %367 = vperm.xlu1 %1364, %v337_v30  }
  0x3b   : > { %1258 = vmatmul.mubr.msk.bf16.gmra.mxu0 %vm488_vm0, %v1373_v26 }
  0x3c   : > { %1261 = vmatprep.mubr.msk.bf16.mxu0 %vm488_vm0, %v1374_v28  ;;  %352 = vperm.xlu0 %1363, %v334_v31  }
  0x3d   : > { %357 = vperm.xlu1 %1364, %v335_v33  }
  0x43   : > { %1262 = vmatmul.mubr.msk.bf16.gmra.mxu0 %vm488_vm0, %v1375_v32 }
  0x44   : > { %1329 = vmatprep.mubr.msk.bf16.mxu0 %vm1418_vm1, %v1417_v34 }
  0x9b   : > { %v423_v41 = vpop.permute.xlu0 %422 }
  0x9c   : > { %v413_v39 = vpop.permute.xlu1 %412 }
  0x9f   : > { %v428_v46 = vpop.permute.xlu0 %427 }
  0xa0   : > { %v418_v44 = vpop.permute.xlu1 %417 }
  0xa3   : > { %v403_v51 = vpop.permute.xlu0 %402 }
  0xa4   : > { %v408_v49 = vpop.permute.xlu1 %407 }
  0xa7   : > { %v393_v56 = vpop.permute.xlu0 %392 }
  0xa8   : > { %v398_v54 = vpop.permute.xlu1 %397 }
  0xab   : > { %v383_v4 = vpop.permute.xlu0 %382 }
  0xac   : > { %v388_v62 = vpop.permute.xlu1 %387 }
  0xaf   : > { %v373_v15 = vpop.permute.xlu0 %372 }
  0xb0   : > { %v378_v12 = vpop.permute.xlu1 %377 }
  0xb3   : > { %v363_v25 = vpop.permute.xlu0 %362 }
  0xb4   : > { %v368_v21 = vpop.permute.xlu1 %367 }
  0xb7   : > { %v353_v35 = vpop.permute.xlu0 %352 }
  0xb8   : > { %v358_v31 = vpop.permute.xlu1 %357 }
  0xeb   : > { %v1576_v36 = vpop.f32.mrf.mxu0 }
  0xec   : > { %v556_v32 = vadd.f32 %v1576_v36, %v363_v25 }
  0xed   : > { %v1578_v37 = vpop.f32.mrf.mxu0 }
  0xef   : > { %v1580_v38 = vpop.f32.mrf.mxu0 }
  0xf0   : > { %v559_v28 = vadd.f32 %v1580_v38, %v368_v21  ;;  %v612_v38 = vmax.f32 %v556_v32, 0.0 }
  0xf1   : > { %v1582_v40 = vpop.f32.mrf.mxu0 }
  0xf3   : > { %v1255_v42 = vpop.f32.mrf.mxu0 }
  0xf4   : > { %v572_v19 = vadd.f32 %v1255_v42, %v383_v4 }
  0xf5   : > { %v563_v43 = vpop.f32.mrf.mxu0 }
  0xf6   : > { %v616_v26 = vmax.f32 %v572_v19, 0.0  ;;  %v564_v27 = vadd.f32 %v563_v43, %v373_v15  ;;  %v548_v43 = vadd.f32 %v1578_v37, %v353_v35  ;;  %v1377_v37 = vld [vmem:[%s1694_s3 + $0x8] sm:$0xff]  }
  0xf7   : > { %v1256_v45 = vpop.f32.mrf.mxu0 }
  0xf8   : > { %v575_v16 = vadd.f32 %v1256_v45, %v388_v62  ;;  %v614_v33 = vmax.f32 %v564_v27, 0.0  ;;  %v610_v36 = vmax.f32 %v548_v43, 0.0 }
  0xf9   : > { %v566_v47 = vpop.f32.mrf.mxu0 }
  0xfa   : > { %v617_v22 = vmax.f32 %v575_v16, 0.0  ;;  %v567_v23 = vadd.f32 %v566_v47, %v378_v12  ;;  %v1379_v47 = vld [vmem:[%s1694_s3 + $0x18] sm:$0xff]  }
  0xfb   : > { %v1259_v48 = vpop.f32.mrf.mxu0 }
  0xfc   : > { %v588_v5 = vadd.f32 %v1259_v48, %v403_v51  ;;  %v629_v29 = vpack.c.bf16 %v617_v22, %v616_v26  ;;  %v615_v30 = vmax.f32 %v567_v23, 0.0  ;;  %v1380_v48 = vld [vmem:[%s1694_s3 + $0x20] sm:$0xff]   ;;  %v1383_v51 = vld [vmem:[%s1694_s3 + $0x38] sm:$0xff]  }
  0xfd   : > { %v579_v50 = vpop.f32.mrf.mxu0 }
  0xfe   : > { %v620_v13 = vmax.f32 %v588_v5, 0.0  ;;  %v580_v14 = vadd.f32 %v579_v50, %v393_v56  ;;  %v628_v42 = vpack.c.bf16 %v615_v30, %v614_v33  ;;  %v1382_v50 = vld [vmem:[%s1694_s3 + $0x30] sm:$0xff]   ;;  %v1388_v56 = vld [vmem:[%s1694_s3 + $0x60] sm:$0xff]  }
  0xff   : > { %v1260_v52 = vpop.f32.mrf.mxu0 }
 0x100   : > { %v591_v0 = vadd.f32 %v1260_v52, %v408_v49  ;;  %v618_v20 = vmax.f32 %v580_v14, 0.0  ;;  %v1381_v49 = vld [vmem:[%s1694_s3 + $0x28] sm:$0xff]   ;;  %v1384_v52 = vld [vmem:[%s1694_s3 + $0x40] sm:$0xff]  }
 0x101   : > { %v582_v53 = vpop.f32.mrf.mxu0 }
 0x102   : > { %v621_v9 = vmax.f32 %v591_v0, 0.0  ;;  %v583_v10 = vadd.f32 %v582_v53, %v398_v54  ;;  %v1385_v53 = vld [vmem:[%s1694_s3 + $0x48] sm:$0xff]   ;;  %v1386_v54 = vld [vmem:[%s1694_s3 + $0x50] sm:$0xff]  }
 0x103   : > { %v1263_v55 = vpop.f32.mrf.mxu0 }
 0x104   : > { %v604_v58 = vadd.f32 %v1263_v55, %v423_v41  ;;  %v631_v17 = vpack.c.bf16 %v621_v9, %v620_v13  ;;  %v619_v18 = vmax.f32 %v583_v10, 0.0  ;;  %v551_v41 = vadd.f32 %v1582_v40, %v358_v31  ;;  %v1378_v40 = vld [vmem:[%s1694_s3 + $0x10] sm:$0xff]   ;;  %v1387_v55 = vld [vmem:[%s1694_s3 + $0x58] sm:$0xff]  }
 0x105   : > { %v595_v57 = vpop.f32.mrf.mxu0 }
 0x106   : > { %v596_v60 = vadd.f32 %v595_v57, %v413_v39  ;;  %v624_v1 = vmax.f32 %v604_v58, 0.0  ;;  %v630_v24 = vpack.c.bf16 %v619_v18, %v618_v20  ;;  %v613_v39 = vmax.f32 %v559_v28, 0.0  ;;  %v1389_v57 = vld [vmem:[%s1694_s3 + $0x68] sm:$0xff]   ;;  %v1390_v58 = vld [vmem:[%s1694_s3 + $0x70] sm:$0xff]  }
 0x107   : > { %v1264_v59 = vpop.f32.mrf.mxu0  ;;  %v611_v45 = vmax.f32 %v551_v41, 0.0 }
 0x108   : > { %v607_v61 = vadd.f32 %v1264_v59, %v428_v46  ;;  %v622_v6 = vmax.f32 %v596_v60, 0.0  ;;  %v1391_v59 = vld [vmem:[%s1694_s3 + $0x78] sm:$0xff]   ;;  %v972_v60 = vld [vmem:[%s1695_s4] sm:$0x1] }
 0x109   : > { %v598_v63 = vpop.f32.mrf.mxu0  ;;  %v626_v46 = vpack.c.bf16 %v611_v45, %v610_v36 }
 0x10a   : > { %v625_v2 = vmax.f32 %v607_v61, 0.0  ;;  %v599_v3 = vadd.f32 %v598_v63, %v418_v44  ;;  %v627_v44 = vpack.c.bf16 %v613_v39, %v612_v38  ;;  %v1419_v61 = vmov 1966171168  }
 0x10b   : > { %v1023_v62 = vunpack.c.l.s4 %v1419_v61  ;;  %v1025_v63 = vlaneseq }
 0x10c   : > { %v633_v7 = vpack.c.bf16 %v625_v2, %v624_v1  ;;  %v623_v8 = vmax.f32 %v599_v3, 0.0  ;;  %v1647_v2 = vld.sshfl [vmem:[%s1696_s5] sm:$0x11 pattern:$0x75316420] }
 0x10d   : > { %v1024_v0 = vunpack.c.0.s8 %v1023_v62  ;;  %v1026_v1 = vshrl.u32 %v1025_v63, 7  ;;  %v1021_v3 = vcombine.high %v1647_v2, %v1647_v2 }
 0x10e   : > { %v632_v11 = vpack.c.bf16 %v623_v8, %v622_v6  ;;  %1265 = vmatprep.subr.bf16.mxu1 %v633_v7  ;;  %1314 = vmatpush3.bf16.msra.mxu0 %v633_v7 }
 0x10f   : > { %1266 = vmatpush3.bf16.msra.mxu1 %v633_v7  ;;  %1315 = vmatprep.subr.bf16.mxu0 %v1417_v34  ;;  %v1651_v4 = vsub.s32 %v1024_v0, %v1026_v1 }
 0x110   : > { %1267 = vmatprep.subr.bf16.mxu1 %v632_v11 }
 0x111   : > { %v1028_v5 = vrot.slane %v1647_v2, %v1651_v4 }
 0x112   : > { %1316 = vmatpush3.bf16.msra.mxu0 %v632_v11 }
 0x113   : > { %1268 = vmatpush3.bf16.msra.mxu1 %v632_v11  ;;  %1317 = vmatprep.subr.bf16.mxu0 %v1417_v34 }
 0x114   : > { %1269 = vmatprep.subr.bf16.mxu1 %v631_v17 }
 0x116   : > { %1318 = vmatpush3.bf16.msra.mxu0 %v631_v17 }
 0x117   : > { %1270 = vmatpush3.bf16.msra.mxu1 %v631_v17  ;;  %1319 = vmatprep.subr.bf16.mxu0 %v1417_v34 }
 0x118   : > { %1271 = vmatprep.subr.bf16.mxu1 %v630_v24 }
 0x11a   : > { %1320 = vmatpush3.bf16.msra.mxu0 %v630_v24 }
 0x11b   : > { %1272 = vmatpush3.bf16.msra.mxu1 %v630_v24  ;;  %1321 = vmatprep.subr.bf16.mxu0 %v1417_v34 }
 0x11c   : > { %1273 = vmatprep.subr.bf16.mxu1 %v629_v29 }
 0x11e   : > { %1322 = vmatpush3.bf16.msra.mxu0 %v629_v29 }
 0x11f   : > { %1274 = vmatpush3.bf16.msra.mxu1 %v629_v29  ;;  %1323 = vmatprep.subr.bf16.mxu0 %v1417_v34 }
 0x120   : > { %1275 = vmatprep.subr.bf16.mxu1 %v628_v42 }
 0x122   : > { %1324 = vmatpush3.bf16.msra.mxu0 %v628_v42 }
 0x123   : > { %1276 = vmatpush3.bf16.msra.mxu1 %v628_v42  ;;  %1325 = vmatprep.subr.bf16.mxu0 %v1417_v34 }
 0x124   : > { %1277 = vmatprep.subr.bf16.mxu1 %v627_v44 }
 0x126   : > { %1326 = vmatpush3.bf16.msra.mxu0 %v627_v44 }
 0x127   : > { %1278 = vmatpush3.bf16.msra.mxu1 %v627_v44  ;;  %1327 = vmatprep.subr.bf16.mxu0 %v1417_v34  ;;  %v1035_v34 = vrot.slane %v1021_v3, %v1651_v4 }
 0x128   : > { %1279 = vmatprep.subr.bf16.mxu1 %v626_v46 }
 0x12a   : > { %1328 = vmatpush3.bf16.msra.mxu0 %v626_v46 }
 0x12b   : > { %1280 = vmatpush3.bf16.msra.mxu1 %v626_v46 }
 0x12d   : > { %1330 = vmatmul.mubr.bf16.vlgmr.msra.gmra.mxu0 %v972_v60 }
 0x12e   : > { %1282 = vmatmul.mubr.bf16.vlgmr.msra.gmra.mxu1 %v1377_v37  ;;  %1070 = vmatprep.mubr.bf16.mxu0 %v1035_v34 }
 0x12f   : > { %1285 = vmatprep.mubr.bf16.mxu1 %v1378_v40 }
 0x136   : > { %1286 = vmatmul.mubr.bf16.gmra.mxu1 %v1379_v47 }
 0x137   : > { %1289 = vmatprep.mubr.bf16.mxu1 %v1380_v48 }
 0x13e   : > { %1290 = vmatmul.mubr.bf16.gmra.mxu1 %v1381_v49 }
 0x13f   : > { %1293 = vmatprep.mubr.bf16.mxu1 %v1382_v50 }
 0x146   : > { %1294 = vmatmul.mubr.bf16.gmra.mxu1 %v1383_v51 }
 0x147   : > { %1297 = vmatprep.mubr.bf16.mxu1 %v1384_v52 }
 0x14e   : > { %1298 = vmatmul.mubr.bf16.gmra.mxu1 %v1385_v53 }
 0x14f   : > { %1301 = vmatprep.mubr.bf16.mxu1 %v1386_v54 }
 0x156   : > { %1302 = vmatmul.mubr.bf16.gmra.mxu1 %v1387_v55 }
 0x157   : > { %1305 = vmatprep.mubr.bf16.mxu1 %v1388_v56 }
 0x15e   : > { %1306 = vmatmul.mubr.bf16.gmra.mxu1 %v1389_v57 }
 0x15f   : > { %1309 = vmatprep.mubr.bf16.mxu1 %v1390_v58 }
 0x166   : > { %1310 = vmatmul.mubr.bf16.gmra.mxu1 %v1391_v59 }
 0x1ee   : > { %v1283_v6 = vpop.f32.mrf.mxu1 }
 0x1ef   : > { %v925_v9 = vmax.f32 %v1283_v6, 0.0 }
 0x1f0   : > { %v796_v7 = vpop.f32.mrf.mxu1 }
 0x1f1   : > { %v923_v12 = vmax.f32 %v796_v7, 0.0 }
 0x1f2   : > { %v1284_v8 = vpop.f32.mrf.mxu1 }
 0x1f3   : > { %v926_v10 = vmax.f32 %v1284_v8, 0.0 }
 0x1f4   : > { %v799_v11 = vpop.f32.mrf.mxu1 }
 0x1f5   : > { %v1656_v13 = vpack.c.bf16 %v926_v10, %v925_v9  ;;  %v924_v14 = vmax.f32 %v799_v11, 0.0 }
 0x1f6   : > { %v1287_v15 = vpop.f32.mrf.mxu1 }
 0x1f7   : > { %v1658_v16 = vpack.c.bf16 %v924_v14, %v923_v12  ;;  %v929_v19 = vmax.f32 %v1287_v15, 0.0 }
 0x1f8   : > { %v812_v17 = vpop.f32.mrf.mxu1 }
 0x1f9   : > { %v927_v22 = vmax.f32 %v812_v17, 0.0 }
 0x1fa   : > { %v1288_v18 = vpop.f32.mrf.mxu1 }
 0x1fb   : > { %v930_v20 = vmax.f32 %v1288_v18, 0.0 }
 0x1fc   : > { %v815_v21 = vpop.f32.mrf.mxu1 }
 0x1fd   : > { %v1660_v23 = vpack.c.bf16 %v930_v20, %v929_v19  ;;  %v928_v24 = vmax.f32 %v815_v21, 0.0 }
 0x1fe   : > { %v1291_v25 = vpop.f32.mrf.mxu1 }
 0x1ff   : > { %v1662_v26 = vpack.c.bf16 %v928_v24, %v927_v22  ;;  %v933_v6 = vmax.f32 %v1291_v25, 0.0 }
 0x200   : > { %v828_v27 = vpop.f32.mrf.mxu1 }
 0x201   : > { %v931_v12 = vmax.f32 %v828_v27, 0.0 }
 0x202   : > { %v1292_v28 = vpop.f32.mrf.mxu1 }
 0x203   : > { %v934_v0 = vmax.f32 %v1292_v28, 0.0 }
 0x204   : > { %v831_v29 = vpop.f32.mrf.mxu1 }
 0x205   : > { %v961_v8 = vpack.c.bf16 %v934_v0, %v933_v6  ;;  %v932_v9 = vmax.f32 %v831_v29, 0.0 }
 0x206   : > { %v1295_v30 = vpop.f32.mrf.mxu1 }
 0x207   : > { %v937_v53 = vmax.f32 %v1295_v30, 0.0  ;;  %v960_v15 = vpack.c.bf16 %v932_v9, %v931_v12 }
 0x208   : > { %v844_v31 = vpop.f32.mrf.mxu1 }
 0x209   : > { %v935_v62 = vmax.f32 %v844_v31, 0.0 }
 0x20a   : > { %v1296_v32 = vpop.f32.mrf.mxu1 }
 0x20b   : > { %v938_v49 = vmax.f32 %v1296_v32, 0.0 }
 0x20c   : > { %v847_v33 = vpop.f32.mrf.mxu1 }
 0x20d   : > { %v963_v58 = vpack.c.bf16 %v938_v49, %v937_v53  ;;  %v936_v59 = vmax.f32 %v847_v33, 0.0 }
 0x20e   : > { %v1299_v35 = vpop.f32.mrf.mxu1 }
 0x20f   : > { %v962_v1 = vpack.c.bf16 %v936_v59, %v935_v62  ;;  %v941_v22 = vmax.f32 %v1299_v35, 0.0 }
 0x210   : > { %v1664_v39 = vpop.f32.mrf.mxu1 }
 0x211   : > { %v939_v27 = vmax.f32 %v1664_v39, 0.0 }
 0x212   : > { %v1300_v41 = vpop.f32.mrf.mxu1 }
 0x213   : > { %v942_v20 = vmax.f32 %v1300_v41, 0.0 }
 0x214   : > { %v863_v42 = vpop.f32.mrf.mxu1 }
 0x215   : > { %v965_v24 = vpack.c.bf16 %v942_v20, %v941_v22  ;;  %v940_v25 = vmax.f32 %v863_v42, 0.0 }
 0x216   : > { %v1303_v38 = vpop.f32.mrf.mxu1 }
 0x217   : > { %v945_v14 = vmax.f32 %v1303_v38, 0.0  ;;  %v964_v28 = vpack.c.bf16 %v940_v25, %v939_v27 }
 0x218   : > { %v876_v43 = vpop.f32.mrf.mxu1 }
 0x219   : > { %v943_v19 = vmax.f32 %v876_v43, 0.0 }
 0x21a   : > { %v1304_v44 = vpop.f32.mrf.mxu1 }
 0x21b   : > { %v946_v10 = vmax.f32 %v1304_v44, 0.0 }
 0x21c   : > { %v879_v45 = vpop.f32.mrf.mxu1 }
 0x21d   : > { %v967_v17 = vpack.c.bf16 %v946_v10, %v945_v14  ;;  %v944_v18 = vmax.f32 %v879_v45, 0.0 }
 0x21e   : > { %v1307_v36 = vpop.f32.mrf.mxu1 }
 0x21f   : > { %v949_v63 = vmax.f32 %v1307_v36, 0.0  ;;  %v966_v21 = vpack.c.bf16 %v944_v18, %v943_v19 }
 0x220   : > { %v892_v46 = vpop.f32.mrf.mxu1 }
 0x221   : > { %v947_v7 = vmax.f32 %v892_v46, 0.0 }
 0x222   : > { %v1308_v37 = vpop.f32.mrf.mxu1 }
 0x223   : > { %v950_v60 = vmax.f32 %v1308_v37, 0.0 }
 0x224   : > { %v895_v40 = vpop.f32.mrf.mxu1 }
 0x225   : > { %v969_v3 = vpack.c.bf16 %v950_v60, %v949_v63  ;;  %v948_v34 = vmax.f32 %v895_v40, 0.0 }
 0x226   : > { %v1311_v47 = vpop.f32.mrf.mxu1 }
 0x227   : > { %v953_v51 = vmax.f32 %v1311_v47, 0.0  ;;  %v968_v11 = vpack.c.bf16 %v948_v34, %v947_v7 }
 0x228   : > { %v908_v48 = vpop.f32.mrf.mxu1 }
 0x229   : > { %v951_v55 = vmax.f32 %v908_v48, 0.0 }
 0x22a   : > { %v1312_v50 = vpop.f32.mrf.mxu1 }
 0x22b   : > { %v954_v52 = vmax.f32 %v1312_v50, 0.0 }
 0x22c   : > { %v911_v54 = vpop.f32.mrf.mxu1 }
 0x22d   : > { %v971_v56 = vpack.c.bf16 %v954_v52, %v953_v51  ;;  %v952_v57 = vmax.f32 %v911_v54, 0.0 }
 0x22f   : > { %v970_v61 = vpack.c.bf16 %v952_v57, %v951_v55  ;;  %1221 = vmatprep.subr.bf16.mxu0 %v971_v56 }
 0x230   : > { %1222 = vmatpush3.bf16.msra.mxu0 %v963_v58 }
 0x231   : > { %1223 = vmatprep.subr.bf16.mxu0 %v970_v61 }
 0x234   : > { %1224 = vmatpush3.bf16.msra.mxu0 %v962_v1 }
 0x235   : > { %1225 = vmatprep.subr.bf16.mxu0 %v969_v3 }
 0x238   : > { %1226 = vmatpush3.bf16.msra.mxu0 %v961_v8 }
 0x239   : > { %1227 = vmatprep.subr.bf16.mxu0 %v968_v11 }
 0x23c   : > { %1228 = vmatpush3.bf16.msra.mxu0 %v960_v15 }
 0x23d   : > { %1229 = vmatprep.subr.bf16.mxu0 %v967_v17 }
 0x240   : > { %1230 = vmatpush3.bf16.msra.mxu0 %v1660_v23  ;;  %v1007_v23 = vpop.f32.mrf.mxu0 }
 0x241   : > { %1231 = vmatprep.subr.bf16.mxu0 %v966_v21 }
 0x242   : > { %v1331_v29 = vpop.f32.mrf.mxu0 }
 0x244   : > { %1232 = vmatpush3.bf16.msra.mxu0 %v1662_v26  ;;  %v1010_v30 = vpop.f32.mrf.mxu0 }
 0x245   : > { %1233 = vmatprep.subr.bf16.mxu0 %v965_v24 }
 0x246   : > { %v1332_v31 = vpop.f32.mrf.mxu0 }
 0x248   : > { %1234 = vmatpush3.bf16.msra.mxu0 %v1656_v13 }
 0x249   : > { %1235 = vmatprep.subr.bf16.mxu0 %v964_v28 }
 0x24c   : > { %1236 = vmatpush3.bf16.msra.mxu0 %v1658_v16 }
 0x24f   : > { %1071 = vmatmul.mubr.bf16.vlgmr.msra.gmra.mxu0 %v1028_v5 }
 0x30f   : > { %v1237_v26 = vpop.f32.mrf.mxu0 }
 0x311   : > { %v1238_v32 = vpop.f32.mrf.mxu0 }
 0x312   : > { %v1239_v33 = vadd.f32 %v1238_v32, %v1237_v26 }
 0x313   : > { %v1240_v35 = vpop.f32.mrf.mxu0 }
 0x314   : > { %v1073_v13 = vadd.f32 %v1239_v33, %v1007_v23 }
 0x315   : > { %v1241_v16 = vpop.f32.mrf.mxu0 }
 0x316   : > { %v1078_v2 = vmax.f32 %v1073_v13, 0.0 }
 0x318   : > { %1079 = vst [vmem:[%s310_s30] sm:$0x1] %v1078_v2 }
 0x319 PF: > { %p13_p9 = scmp.ge.s32.totalorder %s1472_s25, 4   ;;  %s1698_s21 = smov %s1410_s22 }
 0x31a   : > { %s1699_s22 = smov %s1481_s28  ;;  %s1700_s23 = smov %s1472_s25 }
 0x31b   :  { %15 = sbr.rel (!%p13_p9) target bundleno = 2 (0x2), region = 120 }

</bundles_post_ra>
